<compile_context>
chip_gen: v5e
topology: v5e:2x2
jax: 0.10.0
libtpu: 0.0.40
codegen_flags: <defaults>
</compile_context>

<pallas_src>
import jax
import jax.numpy as jnp
from jax.experimental import pallas as pl
from jax.experimental.pallas import tpu as pltpu


# ---------------------------------------------------------------------------
# Kernels
# ---------------------------------------------------------------------------

def _mlp_kernel_resident(x_ref, w1_ref, w2_ref, o_ref):
    """Both (F, F) weights fully VMEM-resident: x @ W1 -> ReLU -> @ W2."""
    x = x_ref[...]
    h = jnp.dot(x, w1_ref[...], preferred_element_type=jnp.float32)
    h = jnp.maximum(h, 0.0)               # ReLU on the f32 accumulator
    h = h.astype(w2_ref.dtype)            # downcast AFTER ReLU
    y = jnp.dot(h, w2_ref[...], preferred_element_type=jnp.float32)
    o_ref[...] = y.astype(o_ref.dtype)


def _mlp_kernel_ktiled(x_ref, w1_ref, w2_ref, o_ref, acc_ref):
    """Hidden dim tiled: W1 streamed by column block, W2 by row block.

    ReLU is per-hidden-column, so each k block contributes independently to
    the f32 accumulator.
    """
    k = pl.program_id(1)

    @pl.when(k == 0)
    def _():
        acc_ref[...] = jnp.zeros_like(acc_ref)

    x = x_ref[...]
    h = jnp.dot(x, w1_ref[...], preferred_element_type=jnp.float32)   # (tm, tk)
    h = jnp.maximum(h, 0.0).astype(w2_ref.dtype)
    acc_ref[...] += jnp.dot(h, w2_ref[...], preferred_element_type=jnp.float32)

    @pl.when(k == pl.num_programs(1) - 1)
    def _():
        o_ref[...] = acc_ref[...].astype(o_ref.dtype)


# ---------------------------------------------------------------------------
# Helpers
# ---------------------------------------------------------------------------

def _round_up(a: int, b: int) -> int:
    return (a + b - 1) // b * b


def _round_down(a: int, b: int) -> int:
    return (a // b) * b


def _vmem_budget_bytes() -> int:
    """Physical VMEM minus headroom for compiler scratch (generation aware)."""
    try:
        phys = int(pltpu.get_tpu_info().vmem_capacity_bytes)
    except Exception:
        phys = 64 << 20                       # conservative (v7x-sized) default
    # Leave ~12.5% (at least 8 MiB) for compiler-internal scratch / spills:
    # v7x: 64 -> ~56 MiB, v5e/v6e: 128 -> ~112 MiB.
    return max(phys - max(phys // 8, 8 << 20), 16 << 20)


def _cost_estimate(B_pad, F, cdt_itemsize, out_itemsize):
    return pl.CostEstimate(
        flops=2 * 2 * B_pad * F * F,                      # two (B,F)x(F,F) matmuls
        transcendentals=0,
        bytes_accessed=(B_pad * F * cdt_itemsize          # x
                        + 2 * F * F * cdt_itemsize        # w1 + w2
                        + B_pad * F * out_itemsize),      # out
    )


# ---------------------------------------------------------------------------
# Forward implementation (weights already transposed to (in, out) layout)
# ---------------------------------------------------------------------------

def _simple_mlp_transposed(x, w1t, w2t, *, tm=None, tk=None,
                           force_hidden_tiling=False):
    B, F = x.shape
    assert w1t.shape == (F, F) and w2t.shape == (F, F)

    cdt = jnp.dtype(w1t.dtype)
    out_dtype = x.dtype
    out_b = jnp.dtype(out_dtype).itemsize

    x_c = x.astype(cdt)
    pack = 16 if cdt.itemsize < 4 else 8          # sublane packing per vreg
    budget = _vmem_budget_bytes()

    # Per-batch-row VMEM bytes: double-buffered x & out tiles plus the f32
    # intermediates (hidden activation h and the second-matmul accumulator).
    per_row = F * (2 * cdt.itemsize + 2 * out_b + 8)

    # Can both full FxF weights stay resident? (conservatively assume the
    # pipeline double-buffers them even though we request Buffered(1))
    w_resident_worst = 2 * (2 * F * F * cdt.itemsize)
    can_ktile = (F % 128 == 0)
    resident_ok = (w_resident_worst + pack * per_row <= budget
                   and not force_hidden_tiling) or not can_ktile
    # TODO(synk): for F not a multiple of 128 that also overflows VMEM, the
    # feature dim would need padding for the streamed path; we fall back to
    # the resident path in that (unlikely) configuration.

    if resident_ok:
        # ---- Path A: weights resident, grid over batch only ----------------
        if tm is None:
            tm = (budget - w_resident_worst) // per_row
        tm = max(pack, min(int(tm), 2048))
        tm = _round_down(tm, pack)
        tm = min(tm, _round_up(B, pack))
        # Keep >= 2 grid steps when the batch allows it so the "parallel"
        # axis can shard across both TensorCores on v7x.
        if B > pack and tm >= B:
            tm = _round_up(pl.cdiv(B, 2), pack)
        tm = max(tm, pack)

        B_pad = _round_up(B, tm)
        if B_pad != B:
            x_c = jnp.pad(x_c, ((0, B_pad - B), (0, 0)))
        grid = (B_pad // tm,)

        vmem_limit = int(min(budget,
                             max(16 << 20,
                                 w_resident_worst + tm * per_row + (4 << 20))))
        cost = _cost_estimate(B_pad, F, cdt.itemsize, out_b)

        def build(single_buffer_weights):
            wmode = ({"pipeline_mode": pl.Buffered(1)}
                     if single_buffer_weights else {})
            return pl.pallas_call(
                _mlp_kernel_resident,
                out_shape=jax.ShapeDtypeStruct((B_pad, F), out_dtype),
                grid=grid,
                in_specs=[
                    pl.BlockSpec((tm, F), lambda i: (i, 0)),          # x tile
                    pl.BlockSpec((F, F), lambda i: (0, 0), **wmode),  # w1 resident
                    pl.BlockSpec((F, F), lambda i: (0, 0), **wmode),  # w2 resident
                ],
                out_specs=pl.BlockSpec((tm, F), lambda i: (i, 0)),
                compiler_params=pltpu.CompilerParams(
                    dimension_semantics=("parallel",),
                    vmem_limit_bytes=vmem_limit,
                ),
                cost_estimate=cost,
            )

        try:
            # Constant index_map -> single-buffered weights halve resident VMEM.
            out_padded = build(True)(x_c, w1t, w2t)
        except Exception:
            # Older jax versions may reject Buffered(1); default buffering.
            out_padded = build(False)(x_c, w1t, w2t)

    else:
        # ---- Path B: stream the hidden dimension (large F) -----------------
        if tk is None:
            tk = 512 if F % 512 == 0 else (256 if F % 256 == 0 else 128)
        tk = min(int(tk), F)
        assert F % tk == 0 and tk % 128 == 0

        # Streamed, double-buffered weight blocks: W1 (F, tk) and W2 (tk, F).
        w_stream = 2 * 2 * F * tk * cdt.itemsize
        # Per-row: x & out (double-buffered) + f32 acc (tm,F) + f32 h (tm,tk).
        per_row_b = F * (2 * cdt.itemsize + 2 * out_b + 4) + tk * 4

        if tm is None:
            tm = (budget - w_stream) // per_row_b
        tm = max(pack, min(int(tm), 1024))
        tm = _round_down(tm, pack)
        tm = min(tm, _round_up(B, pack))
        if B > pack and tm >= B:
            tm = _round_up(pl.cdiv(B, 2), pack)
        tm = max(tm, pack)

        B_pad = _round_up(B, tm)
        if B_pad != B:
            x_c = jnp.pad(x_c, ((0, B_pad - B), (0, 0)))
        grid = (B_pad // tm, F // tk)

        vmem_limit = int(min(budget,
                             max(16 << 20,
                                 w_stream + tm * per_row_b + (4 << 20))))
        cost = _cost_estimate(B_pad, F, cdt.itemsize, out_b)

        out_padded = pl.pallas_call(
            _mlp_kernel_ktiled,
            out_shape=jax.ShapeDtypeStruct((B_pad, F), out_dtype),
            grid=grid,
            in_specs=[
                pl.BlockSpec((tm, F), lambda i, k: (i, 0)),   # x: resident over k
                pl.BlockSpec((F, tk), lambda i, k: (0, k)),   # W1 column block
                pl.BlockSpec((tk, F), lambda i, k: (k, 0)),   # W2 row block
            ],
            out_specs=pl.BlockSpec((tm, F), lambda i, k: (i, 0)),
            scratch_shapes=[pltpu.VMEM((tm, F), jnp.float32)],
            compiler_params=pltpu.CompilerParams(
                dimension_semantics=("parallel", "arbitrary"),
                vmem_limit_bytes=vmem_limit,
            ),
            cost_estimate=cost,
        )(x_c, w1t, w2t)

    return out_padded[:B] if B_pad != B else out_padded


# ---------------------------------------------------------------------------
# Public API
# ---------------------------------------------------------------------------

def make_simple_mlp(w1, w2, *, compute_dtype=None, tm=None, tk=None,
                    force_hidden_tiling=False):
    """Hoists the per-weight transpose+cast out of the per-call path.

    w1, w2: (out_features, in_features) PyTorch-layout weights.
    Returns forward(x) computing ReLU(x @ w1.T) @ w2.T, output in x.dtype.
    """
    F = w1.shape[1]
    assert w1.shape == (F, F) and w2.shape == (F, F)

    if compute_dtype is None:
        # Default to the fast bf16 MXU path (f32 accumulation) for f32 weights.
        compute_dtype = (jnp.bfloat16 if jnp.dtype(w1.dtype) == jnp.float32
                         else w1.dtype)
    cdt = jnp.dtype(compute_dtype)

    # One-time HBM transpose+cast to (in_features, out_features).
    w1t = jnp.swapaxes(w1, 0, 1).astype(cdt)
    w2t = jnp.swapaxes(w2, 0, 1).astype(cdt)

    def forward(x):
        return _simple_mlp_transposed(x, w1t, w2t, tm=tm, tk=tk,
                                      force_hidden_tiling=force_hidden_tiling)

    return forward


def simple_mlp(x, w1, w2, *, compute_dtype=None, tm=None, tk=None,
               force_hidden_tiling=False):
    """One-shot convenience wrapper (transposes weights per call)."""
    fwd = make_simple_mlp(w1, w2, compute_dtype=compute_dtype, tm=tm, tk=tk,
                          force_hidden_tiling=force_hidden_tiling)
    return fwd(x)


def _torch_linear_init(key, out_features, in_features, dtype=jnp.float32):
    # Deterministic stand-in for torch.nn.Linear default init:
    # uniform(-1/sqrt(in_features), 1/sqrt(in_features)).
    bound = 1.0 / (in_features ** 0.5)
    return jax.random.uniform(key, (out_features, in_features),
                              dtype=dtype, minval=-bound, maxval=bound)


if __name__ == "__main__":
    num_features = 128
    batch = 8

    key = jax.random.PRNGKey(0)
    kx, k1, k2 = jax.random.split(key, 3)

    x = jax.random.normal(kx, (batch, num_features), dtype=jnp.float32)
    w1 = _torch_linear_init(k1, num_features, num_features)
    w2 = _torch_linear_init(k2, num_features, num_features)

    # Reference in plain JAX (PyTorch Linear convention: x @ W.T).
    ref = jnp.maximum(x @ w1.T, 0.0) @ w2.T

    # Default path: bf16 compute / f32 accumulation, weights hoisted once.
    mlp = make_simple_mlp(w1, w2)
    out = mlp(x)
    jax.block_until_ready(out)
    assert out.shape == (batch, num_features)
    assert jnp.allclose(out, ref, atol=1e-1, rtol=1e-1)

    # Strict f32 compute path (tight tolerance).
    out_f32 = simple_mlp(x, w1, w2, compute_dtype=jnp.float32)
    jax.block_until_ready(out_f32)
    assert out_f32.shape == (batch, num_features)
    assert jnp.allclose(out_f32, ref, atol=1e-4, rtol=1e-4)

    # Hidden-dim streamed path: multiple k steps and >=2 batch grid steps,
    # exercising the pl.when-gated f32 accumulator.
    F2, B2 = 256, 64
    kx2, k3, k4 = jax.random.split(jax.random.PRNGKey(1), 3)
    x2 = jax.random.normal(kx2, (B2, F2), dtype=jnp.float32)
    w3 = _torch_linear_init(k3, F2, F2)
    w4 = _torch_linear_init(k4, F2, F2)
    ref2 = jnp.maximum(x2 @ w3.T, 0.0) @ w4.T
    out2 = simple_mlp(x2, w3, w4, compute_dtype=jnp.float32,
                      force_hidden_tiling=True, tk=128, tm=32)
    jax.block_until_ready(out2)
    assert out2.shape == (B2, F2)
    assert jnp.allclose(out2, ref2, atol=1e-3, rtol=1e-3)

    print("KERNEL_OK")
</pallas_src>

<mosaic_0001>
module attributes {stable_mosaic.version = 11 : i64} {
  func.func @_mlp_kernel_resident(%arg0: i32, %arg1: memref<16x128xbf16, #tpu.memory_space<vmem>>, %arg2: memref<128x128xbf16, #tpu.memory_space<vmem>>, %arg3: memref<128x128xbf16, #tpu.memory_space<vmem>>, %arg4: memref<16x128xf32, #tpu.memory_space<vmem>>) attributes {dimension_semantics = [#tpu.dimension_semantics<parallel>], iteration_bounds = array<i64: 1>, scalar_prefetch = 0 : i64, scratch_operands = 0 : i64, tpu.core_type = #tpu.core_type<tc>, window_params = [{transform_indices = @transform_0, window_bounds = array<i64: 16, 128>}, {pipeline_mode = #tpu.pipeline_mode<synchronous>, transform_indices = @transform_1, window_bounds = array<i64: 128, 128>}, {pipeline_mode = #tpu.pipeline_mode<synchronous>, transform_indices = @transform_2, window_bounds = array<i64: 128, 128>}, {transform_indices = @transform_3, window_bounds = array<i64: 16, 128>}]} {
    %c0 = arith.constant 0 : index
    %c0_0 = arith.constant 0 : index
    %0 = vector.load %arg1[%c0, %c0_0] : memref<16x128xbf16, #tpu.memory_space<vmem>>, vector<16x128xbf16>
    %c0_1 = arith.constant 0 : index
    %c0_2 = arith.constant 0 : index
    %1 = vector.load %arg2[%c0_1, %c0_2] : memref<128x128xbf16, #tpu.memory_space<vmem>>, vector<128x128xbf16>
    %cst = arith.constant dense<0.000000e+00> : vector<16x128xf32>
    %2 = tpu.matmul %0, %1, %cst {dimension_numbers = #tpu.dot_dimension_numbers<[1], [0], [0], [1], [0, 0, 1, 1], [], []>} : vector<16x128xbf16>, vector<128x128xbf16>, vector<16x128xf32> -> vector<16x128xf32>
    %cst_3 = arith.constant 0.000000e+00 : f32
    %3 = vector.broadcast %cst_3 : f32 to vector<16x128xf32>
    %4 = arith.maximumf %2, %3 : vector<16x128xf32>
    %5 = arith.truncf %4 : vector<16x128xf32> to vector<16x128xbf16>
    %c0_4 = arith.constant 0 : index
    %c0_5 = arith.constant 0 : index
    %6 = vector.load %arg3[%c0_4, %c0_5] : memref<128x128xbf16, #tpu.memory_space<vmem>>, vector<128x128xbf16>
    %cst_6 = arith.constant dense<0.000000e+00> : vector<16x128xf32>
    %7 = tpu.matmul %5, %6, %cst_6 {dimension_numbers = #tpu.dot_dimension_numbers<[1], [0], [0], [1], [0, 0, 1, 1], [], []>} : vector<16x128xbf16>, vector<128x128xbf16>, vector<16x128xf32> -> vector<16x128xf32>
    %c0_7 = arith.constant 0 : index
    %c0_8 = arith.constant 0 : index
    %8 = vector.load %arg4[%c0_7, %c0_8] : memref<16x128xf32, #tpu.memory_space<vmem>>, vector<16x128xf32>
    tpu.vector_store %arg4[%c0_7, %c0_8], %7 {strides = array<i32>} : memref<16x128xf32, #tpu.memory_space<vmem>>, vector<16x128xf32>,
    return
  }
  func.func @transform_0(%arg0: i32) -> (i32, i32) {
    %c0_i32 = arith.constant 0 : i32
    %c0_i32_0 = arith.constant 0 : i32
    return %arg0, %c0_i32 : i32, i32
  }
  func.func @transform_1(%arg0: i32) -> (i32, i32) {
    %c0_i32 = arith.constant 0 : i32
    %c0_i32_0 = arith.constant 0 : i32
    %c0_i32_1 = arith.constant 0 : i32
    return %c0_i32, %c0_i32_0 : i32, i32
  }
  func.func @transform_2(%arg0: i32) -> (i32, i32) {
    %c0_i32 = arith.constant 0 : i32
    %c0_i32_0 = arith.constant 0 : i32
    %c0_i32_1 = arith.constant 0 : i32
    return %c0_i32, %c0_i32_0 : i32, i32
  }
  func.func @transform_3(%arg0: i32) -> (i32, i32) {
    %c0_i32 = arith.constant 0 : i32
    %c0_i32_0 = arith.constant 0 : i32
    return %arg0, %c0_i32 : i32, i32
  }
}

module attributes {stable_mosaic.version = 11 : i64} {
  func.func @_mlp_kernel_resident(%arg0: i32, %arg1: memref<16x128xbf16, #tpu.memory_space<vmem>>, %arg2: memref<128x128xbf16, #tpu.memory_space<vmem>>, %arg3: memref<128x128xbf16, #tpu.memory_space<vmem>>, %arg4: memref<16x128xf32, #tpu.memory_space<vmem>>) attributes {dimension_semantics = [#tpu.dimension_semantics<parallel>], iteration_bounds = array<i64: 1>, scalar_prefetch = 0 : i64, scratch_operands = 0 : i64, tpu.core_type = #tpu.core_type<tc>, window_params = [{transform_indices = @transform_0, window_bounds = array<i64: 16, 128>}, {pipeline_mode = #tpu.pipeline_mode<synchronous>, transform_indices = @transform_1, window_bounds = array<i64: 128, 128>}, {pipeline_mode = #tpu.pipeline_mode<synchronous>, transform_indices = @transform_2, window_bounds = array<i64: 128, 128>}, {transform_indices = @transform_3, window_bounds = array<i64: 16, 128>}]} {
    %c0 = arith.constant 0 : index
    %c0_0 = arith.constant 0 : index
    %0 = vector.load %arg1[%c0, %c0_0] : memref<16x128xbf16, #tpu.memory_space<vmem>>, vector<16x128xbf16>
    %c0_1 = arith.constant 0 : index
    %c0_2 = arith.constant 0 : index
    %1 = vector.load %arg2[%c0_1, %c0_2] : memref<128x128xbf16, #tpu.memory_space<vmem>>, vector<128x128xbf16>
    %cst = arith.constant dense<0.000000e+00> : vector<16x128xf32>
    %2 = tpu.matmul %0, %1, %cst {dimension_numbers = #tpu.dot_dimension_numbers<[1], [0], [0], [1], [0, 0, 1, 1], [], []>} : vector<16x128xbf16>, vector<128x128xbf16>, vector<16x128xf32> -> vector<16x128xf32>
    %cst_3 = arith.constant 0.000000e+00 : f32
    %3 = vector.broadcast %cst_3 : f32 to vector<16x128xf32>
    %4 = arith.maximumf %2, %3 : vector<16x128xf32>
    %5 = arith.truncf %4 : vector<16x128xf32> to vector<16x128xbf16>
    %c0_4 = arith.constant 0 : index
    %c0_5 = arith.constant 0 : index
    %6 = vector.load %arg3[%c0_4, %c0_5] : memref<128x128xbf16, #tpu.memory_space<vmem>>, vector<128x128xbf16>
    %cst_6 = arith.constant dense<0.000000e+00> : vector<16x128xf32>
    %7 = tpu.matmul %5, %6, %cst_6 {dimension_numbers = #tpu.dot_dimension_numbers<[1], [0], [0], [1], [0, 0, 1, 1], [], []>} : vector<16x128xbf16>, vector<128x128xbf16>, vector<16x128xf32> -> vector<16x128xf32>
    %c0_7 = arith.constant 0 : index
    %c0_8 = arith.constant 0 : index
    %8 = vector.load %arg4[%c0_7, %c0_8] : memref<16x128xf32, #tpu.memory_space<vmem>>, vector<16x128xf32>
    tpu.vector_store %arg4[%c0_7, %c0_8], %7 {strides = array<i32>} : memref<16x128xf32, #tpu.memory_space<vmem>>, vector<16x128xf32>,
    return
  }
  func.func @transform_0(%arg0: i32) -> (i32, i32) {
    %c0_i32 = arith.constant 0 : i32
    %c0_i32_0 = arith.constant 0 : i32
    return %arg0, %c0_i32 : i32, i32
  }
  func.func @transform_1(%arg0: i32) -> (i32, i32) {
    %c0_i32 = arith.constant 0 : i32
    %c0_i32_0 = arith.constant 0 : i32
    %c0_i32_1 = arith.constant 0 : i32
    return %c0_i32, %c0_i32_0 : i32, i32
  }
  func.func @transform_2(%arg0: i32) -> (i32, i32) {
    %c0_i32 = arith.constant 0 : i32
    %c0_i32_0 = arith.constant 0 : i32
    %c0_i32_1 = arith.constant 0 : i32
    return %c0_i32, %c0_i32_0 : i32, i32
  }
  func.func @transform_3(%arg0: i32) -> (i32, i32) {
    %c0_i32 = arith.constant 0 : i32
    %c0_i32_0 = arith.constant 0 : i32
    return %arg0, %c0_i32 : i32, i32
  }
}

</mosaic_0001>

<bundles_post_ra>
// kernel: tpu_custom_call.1
= control target key start
LH: loop header
LB: loop body
LE: loop exit
PB: predicated region body
PF: predicated region fallthrough
CT: control target
= control target key end

     0   :  { %8 = vsyncpa [#allocation3], 0  ;;  %s486_s0 = inlined_call_operand.hbm [shape: bf16[16,128], index: 0, kind: input, shape index: {}]   ;;  %s487_s1 = inlined_call_operand.hbm [shape: bf16[128,128], index: 1, kind: input, shape index: {}]   ;;  %s488_s2 = inlined_call_operand.hbm [shape: bf16[128,128], index: 2, kind: input, shape index: {}]   ;;  %s489_s3 = inlined_call_operand.hbm [shape: f32[16,128], index: 3, kind: output, shape index: {}]  }
   0x1   :  { %9 = vsyncpa [#allocation6], 0 }
   0x2   :  { %10 = vsyncpa [#allocation4], 0  ;;  %s28_s14 = sshll.u32 %s487_s1, 4  ;;  %s446_s15 = smov [#allocation5]   ;;  %s29_s14 = int_to_ptr.hbm [resolvable:$true] %s28_s14 }
   0x3   :  { %s30_s16 = sshll.u32 %s446_s15, 4  ;;  %s15_s19 = sshll.u32 %s486_s0, 4  ;;  %s31_s16 = int_to_ptr.vmem [resolvable:$true] %s30_s16  ;;  %s16_s19 = int_to_ptr.hbm [resolvable:$true] %s15_s19 }
   0x4   :  { %s447_s20 = smov 64   ;;  %s448_s21 = smov 4  }
   0x5   :  { %36 = dma.hbm_to_vmem [thread:$0]  %s29_s14, 1024, %s31_s16, [#allocation6], %s447_s20, %s447_s20, %s448_s21  }
   0x6   :  { %s449_s22 = smov [#allocation2]   ;;  %s41_s26 = sshll.u32 %s488_s2, 4  ;;  %s42_s26 = int_to_ptr.hbm [resolvable:$true] %s41_s26 }
   0x7   :  { %s17_s23 = sshll.u32 %s449_s22, 4  ;;  %s450_s1 = smov [#allocation7]   ;;  %s18_s23 = int_to_ptr.vmem [resolvable:$true] %s17_s23 }
   0x8   :  { %23 = dma.hbm_to_vmem [thread:$0]  %s16_s19, 128, %s18_s23, [#allocation3], %s447_s20, %s447_s20, %s448_s21  }
   0x9   :  { %s43_s27 = sshll.u32 %s450_s1, 4  ;;  %s44_s27 = int_to_ptr.vmem [resolvable:$true] %s43_s27 }
   0xa   :  { %49 = dma.hbm_to_vmem [thread:$0]  %s42_s26, 1024, %s44_s27, [#allocation6], %s447_s20, %s447_s20, %s448_s21  }
   0xb   :  { %440 = dma.done.wait [#allocation3], 128  }
   0xc   :  { %441 = vsyncadd [#allocation3], 4294967168 }
   0xd   :  { %442 = dma.done.wait [#allocation6], 2048  }
   0xe   :  { %443 = vsyncadd [#allocation6], 4294965248  ;;  %v327_v0 = vld [vmem:[#allocation5 + $0x38] sm:$0xff]  ;;  %v326_v1 = vld [vmem:[#allocation5 + $0x30] sm:$0xff]  ;;  %s451_s0 = smov [#allocation8]   ;;  %s237_s30 = sshll.u32 %s489_s3, 4  ;;  %s238_s30 = int_to_ptr.hbm [resolvable:$true] %s237_s30 }
   0xf   :  { %134 = vmatpush.bf16.msra.mxu0 %v327_v0  ;;  %v335_v2 = vld [vmem:[#allocation7 + $0x38] sm:$0xff]  ;;  %v334_v3 = vld [vmem:[#allocation7 + $0x30] sm:$0xff]  ;;  %v325_v4 = vld [vmem:[#allocation5 + $0x28] sm:$0xff]  ;;  %s235_s2 = sshll.u32 %s451_s0, 4  ;;  %s452_s4 = smov 128   ;;  %s236_s2 = int_to_ptr.vmem [resolvable:$true] %s235_s2 }
  0x10   :  { %215 = vmatpush.bf16.msra.mxu1 %v335_v2  ;;  %v333_v5 = vld [vmem:[#allocation7 + $0x28] sm:$0xff]  ;;  %v324_v6 = vld [vmem:[#allocation5 + $0x20] sm:$0xff]  ;;  %v323_v8 = vld [vmem:[#allocation5 + $0x18] sm:$0xff]  ;;  %s453_s5 = smov 8  }
  0x11   :  { %v332_v7 = vld [vmem:[#allocation7 + $0x20] sm:$0xff]  ;;  %v331_v9 = vld [vmem:[#allocation7 + $0x18] sm:$0xff]  ;;  %v322_v10 = vld [vmem:[#allocation5 + $0x10] sm:$0xff] }
  0x12   :  { %v321_v11 = vld [vmem:[#allocation5 + $0x8] sm:$0xff]  ;;  %v320_v12 = vld [vmem:[#allocation5] sm:$0xff]  ;;  %v319_v13 = vld [vmem:[#allocation2] sm:$0xff] }
  0x13   :  { %135 = vmatpush.bf16.msra.mxu0 %v326_v1  ;;  %v330_v14 = vld [vmem:[#allocation7 + $0x10] sm:$0xff]  ;;  %v329_v15 = vld [vmem:[#allocation7 + $0x8] sm:$0xff]  ;;  %v328_v16 = vld [vmem:[#allocation7] sm:$0xff] }
  0x14   :  { %216 = vmatpush.bf16.msra.mxu1 %v334_v3 }
  0x17   :  { %136 = vmatpush.bf16.msra.mxu0 %v325_v4 }
  0x18   :  { %217 = vmatpush.bf16.msra.mxu1 %v333_v5 }
  0x1b   :  { %137 = vmatpush.bf16.msra.mxu0 %v324_v6 }
  0x1c   :  { %218 = vmatpush.bf16.msra.mxu1 %v332_v7 }
  0x1f   :  { %138 = vmatpush.bf16.msra.mxu0 %v323_v8 }
  0x20   :  { %219 = vmatpush.bf16.msra.mxu1 %v331_v9 }
  0x23   :  { %139 = vmatpush.bf16.msra.mxu0 %v322_v10 }
  0x24   :  { %220 = vmatpush.bf16.msra.mxu1 %v330_v14 }
  0x27   :  { %140 = vmatpush.bf16.msra.mxu0 %v321_v11 }
  0x28   :  { %221 = vmatpush.bf16.msra.mxu1 %v329_v15 }
  0x2b   :  { %141 = vmatpush.bf16.msra.mxu0 %v320_v12 }
  0x2c   :  { %222 = vmatpush.bf16.msra.mxu1 %v328_v16 }
  0x2e   :  { %142 = vmatmul.bf16.vlgmr.msra.gmra.mxu0 %v319_v13 }
  0xab   :  { %v143_v17 = vpop.f32.mrf.mxu0 }
  0xac   :  { %v148_v19 = vmax.f32 %v143_v17, 0.0 }
  0xb3   :  { %v145_v18 = vpop.f32.mrf.mxu0 }
  0xb4   :  { %v149_v20 = vmax.f32 %v145_v18, 0.0 }
  0xb6   :  { %v150_v21 = vpack.c.bf16 %v149_v20, %v148_v19 }
  0xb8   :  { %223 = vmatmul.bf16.vlgmr.msra.gmra.mxu1 %v150_v21 }
 0x135   :  { %v224_v22 = vpop.f32.mrf.mxu1 }
 0x136   :  { %229 = vst [vmem:[#allocation8] sm:$0xff] %v224_v22 }
 0x13d   :  { %v226_v23 = vpop.f32.mrf.mxu1 }
 0x13e   :  { %230 = vst [vmem:[#allocation8 + $0x8] sm:$0xff] %v226_v23 }
 0x13f   :  { %243 = dma.vmem_to_hbm [thread:$0]  %s236_s2, 256, %s238_s30, [#allocation4], %s452_s4, %s452_s4, %s453_s5  }
 0x140   :  { %444 = dma.done.wait [#allocation4], 256  }
 0x141   :  { %445 = vsyncadd [#allocation4], 4294967040 }
 0x142   :  { %248 = vsyncpa [#allocation3], 1 }
 0x143   :  { %249 = vsyncpa [#allocation6], 1 }
 0x144   :  { %250 = vsyncpa [#allocation4], 1 }

// kernel: tpu_custom_call.1
= control target key start
LH: loop header
LB: loop body
LE: loop exit
PB: predicated region body
PF: predicated region fallthrough
CT: control target
= control target key end

     0   :  { %8 = vsyncpa [#allocation3], 0  ;;  %s486_s0 = inlined_call_operand.hbm [shape: bf16[16,128], index: 0, kind: input, shape index: {}]   ;;  %s487_s1 = inlined_call_operand.hbm [shape: bf16[128,128], index: 1, kind: input, shape index: {}]   ;;  %s488_s2 = inlined_call_operand.hbm [shape: bf16[128,128], index: 2, kind: input, shape index: {}]   ;;  %s489_s3 = inlined_call_operand.hbm [shape: f32[16,128], index: 3, kind: output, shape index: {}]  }
   0x1   :  { %9 = vsyncpa [#allocation6], 0 }
   0x2   :  { %10 = vsyncpa [#allocation4], 0  ;;  %s28_s14 = sshll.u32 %s487_s1, 4  ;;  %s446_s15 = smov [#allocation5]   ;;  %s29_s14 = int_to_ptr.hbm [resolvable:$true] %s28_s14 }
   0x3   :  { %s30_s16 = sshll.u32 %s446_s15, 4  ;;  %s15_s19 = sshll.u32 %s486_s0, 4  ;;  %s31_s16 = int_to_ptr.vmem [resolvable:$true] %s30_s16  ;;  %s16_s19 = int_to_ptr.hbm [resolvable:$true] %s15_s19 }
   0x4   :  { %s447_s20 = smov 64   ;;  %s448_s21 = smov 4  }
   0x5   :  { %36 = dma.hbm_to_vmem [thread:$0]  %s29_s14, 1024, %s31_s16, [#allocation6], %s447_s20, %s447_s20, %s448_s21  }
   0x6   :  { %s449_s22 = smov [#allocation2]   ;;  %s41_s26 = sshll.u32 %s488_s2, 4  ;;  %s42_s26 = int_to_ptr.hbm [resolvable:$true] %s41_s26 }
   0x7   :  { %s17_s23 = sshll.u32 %s449_s22, 4  ;;  %s450_s1 = smov [#allocation7]   ;;  %s18_s23 = int_to_ptr.vmem [resolvable:$true] %s17_s23 }
   0x8   :  { %23 = dma.hbm_to_vmem [thread:$0]  %s16_s19, 128, %s18_s23, [#allocation3], %s447_s20, %s447_s20, %s448_s21  }
   0x9   :  { %s43_s27 = sshll.u32 %s450_s1, 4  ;;  %s44_s27 = int_to_ptr.vmem [resolvable:$true] %s43_s27 }
   0xa   :  { %49 = dma.hbm_to_vmem [thread:$0]  %s42_s26, 1024, %s44_s27, [#allocation6], %s447_s20, %s447_s20, %s448_s21  }
   0xb   :  { %440 = dma.done.wait [#allocation3], 128  }
   0xc   :  { %441 = vsyncadd [#allocation3], 4294967168 }
   0xd   :  { %442 = dma.done.wait [#allocation6], 2048  }
   0xe   :  { %443 = vsyncadd [#allocation6], 4294965248  ;;  %v327_v0 = vld [vmem:[#allocation5 + $0x38] sm:$0xff]  ;;  %v326_v1 = vld [vmem:[#allocation5 + $0x30] sm:$0xff]  ;;  %s451_s0 = smov [#allocation8]   ;;  %s237_s30 = sshll.u32 %s489_s3, 4  ;;  %s238_s30 = int_to_ptr.hbm [resolvable:$true] %s237_s30 }
   0xf   :  { %134 = vmatpush.bf16.msra.mxu0 %v327_v0  ;;  %v335_v2 = vld [vmem:[#allocation7 + $0x38] sm:$0xff]  ;;  %v334_v3 = vld [vmem:[#allocation7 + $0x30] sm:$0xff]  ;;  %v325_v4 = vld [vmem:[#allocation5 + $0x28] sm:$0xff]  ;;  %s235_s2 = sshll.u32 %s451_s0, 4  ;;  %s452_s4 = smov 128   ;;  %s236_s2 = int_to_ptr.vmem [resolvable:$true] %s235_s2 }
  0x10   :  { %215 = vmatpush.bf16.msra.mxu1 %v335_v2  ;;  %v333_v5 = vld [vmem:[#allocation7 + $0x28] sm:$0xff]  ;;  %v324_v6 = vld [vmem:[#allocation5 + $0x20] sm:$0xff]  ;;  %v323_v8 = vld [vmem:[#allocation5 + $0x18] sm:$0xff]  ;;  %s453_s5 = smov 8  }
  0x11   :  { %v332_v7 = vld [vmem:[#allocation7 + $0x20] sm:$0xff]  ;;  %v331_v9 = vld [vmem:[#allocation7 + $0x18] sm:$0xff]  ;;  %v322_v10 = vld [vmem:[#allocation5 + $0x10] sm:$0xff] }
  0x12   :  { %v321_v11 = vld [vmem:[#allocation5 + $0x8] sm:$0xff]  ;;  %v320_v12 = vld [vmem:[#allocation5] sm:$0xff]  ;;  %v319_v13 = vld [vmem:[#allocation2] sm:$0xff] }
  0x13   :  { %135 = vmatpush.bf16.msra.mxu0 %v326_v1  ;;  %v330_v14 = vld [vmem:[#allocation7 + $0x10] sm:$0xff]  ;;  %v329_v15 = vld [vmem:[#allocation7 + $0x8] sm:$0xff]  ;;  %v328_v16 = vld [vmem:[#allocation7] sm:$0xff] }
  0x14   :  { %216 = vmatpush.bf16.msra.mxu1 %v334_v3 }
  0x17   :  { %136 = vmatpush.bf16.msra.mxu0 %v325_v4 }
  0x18   :  { %217 = vmatpush.bf16.msra.mxu1 %v333_v5 }
  0x1b   :  { %137 = vmatpush.bf16.msra.mxu0 %v324_v6 }
  0x1c   :  { %218 = vmatpush.bf16.msra.mxu1 %v332_v7 }
  0x1f   :  { %138 = vmatpush.bf16.msra.mxu0 %v323_v8 }
  0x20   :  { %219 = vmatpush.bf16.msra.mxu1 %v331_v9 }
  0x23   :  { %139 = vmatpush.bf16.msra.mxu0 %v322_v10 }
  0x24   :  { %220 = vmatpush.bf16.msra.mxu1 %v330_v14 }
  0x27   :  { %140 = vmatpush.bf16.msra.mxu0 %v321_v11 }
  0x28   :  { %221 = vmatpush.bf16.msra.mxu1 %v329_v15 }
  0x2b   :  { %141 = vmatpush.bf16.msra.mxu0 %v320_v12 }
  0x2c   :  { %222 = vmatpush.bf16.msra.mxu1 %v328_v16 }
  0x2e   :  { %142 = vmatmul.bf16.vlgmr.msra.gmra.mxu0 %v319_v13 }
  0xab   :  { %v143_v17 = vpop.f32.mrf.mxu0 }
  0xac   :  { %v148_v19 = vmax.f32 %v143_v17, 0.0 }
  0xb3   :  { %v145_v18 = vpop.f32.mrf.mxu0 }
  0xb4   :  { %v149_v20 = vmax.f32 %v145_v18, 0.0 }
  0xb6   :  { %v150_v21 = vpack.c.bf16 %v149_v20, %v148_v19 }
  0xb8   :  { %223 = vmatmul.bf16.vlgmr.msra.gmra.mxu1 %v150_v21 }
 0x135   :  { %v224_v22 = vpop.f32.mrf.mxu1 }
 0x136   :  { %229 = vst [vmem:[#allocation8] sm:$0xff] %v224_v22 }
 0x13d   :  { %v226_v23 = vpop.f32.mrf.mxu1 }
 0x13e   :  { %230 = vst [vmem:[#allocation8 + $0x8] sm:$0xff] %v226_v23 }
 0x13f   :  { %243 = dma.vmem_to_hbm [thread:$0]  %s236_s2, 256, %s238_s30, [#allocation4], %s452_s4, %s452_s4, %s453_s5  }
 0x140   :  { %444 = dma.done.wait [#allocation4], 256  }
 0x141   :  { %445 = vsyncadd [#allocation4], 4294967040 }
 0x142   :  { %248 = vsyncpa [#allocation3], 1 }
 0x143   :  { %249 = vsyncpa [#allocation6], 1 }
 0x144   :  { %250 = vsyncpa [#allocation4], 1 }

</bundles_post_ra>
